<compile_context>
chip_gen: v5e
topology: v5e:2x2
jax: 0.10.0
libtpu: 0.0.40
codegen_flags: <defaults>
</compile_context>

<pallas_src>
import jax
import jax.numpy as jnp
from jax.experimental import pallas as pl
from jax.experimental.pallas import tpu as pltpu

# problem sizes (small, consistent with the module's forward)
B = 2          # batch
N = 8          # graph nodes
F = 32         # inSize == outSize (required for resnet add & m_all/d_all cat)
LAYERS = 3     # self.gcnlayers
DROPOUT_P = 0.1  # dropout is identity at inference; kept only for documentation

OUT_ROWS = (LAYERS + 1) * B * 2  # (layer_step, batch, node{0,1}) row-major


def gcn_kernel(lbd_ref, x_ref, wt_ref, b_ref, o_ref):
    """Single invocation: runs all GCN layers for all B batch elements."""
    Lbd = lbd_ref[...]                                      # (B*N, B*N) block-diagonal
    Wt = wt_ref[...]                                        # (F, F) already (in, out)
    b_full = jnp.broadcast_to(b_ref[...], (B * N, F))       # bias broadcast hoisted once

    # Merge leading dims: layout-preserving (last two dims unchanged) -> free.
    xs = x_ref[...].reshape(B * N, F)

    # layer-step 0: store initial node-0 / node-1 rows directly (static offsets)
    for b in range(B):
        base = b * 2
        o_ref[base:base + 2, :] = xs[b * N:b * N + 2, :]

    # static unrolled layer loop (LAYERS is a small compile-time constant)
    for step in range(1, LAYERS + 1):
        # Graph aggregation for all batches in ONE MXU push via block-diag L.
        hs = jnp.dot(Lbd, xs, preferred_element_type=jnp.float32)   # (B*N, F)
        # Linear fused across all batches: one (B*N, F) @ (F, F) push.
        a = jnp.dot(hs, Wt, preferred_element_type=jnp.float32) + b_full
        a = jnp.maximum(a, 0.0)                              # actFunc = ReLU
        # Dropout(p=DROPOUT_P): identity in eval/inference mode.
        xs = a + xs                                          # resnet skip
        # Store node-0 / node-1 rows for this layer step at static offsets.
        for b in range(B):
            base = step * B * 2 + b * 2
            o_ref[base:base + 2, :] = xs[b * N:b * N + 2, :]


def gcn_forward(x, L, W, bias):
    """x: (B, N, F), L: (B, N, N), W: (F, F) torch (out,in), bias: (1, F)
       -> (m_all, d_all), each (B, LAYERS+1, F)."""
    Wt = W.T  # transpose once outside the kernel (torch (out,in) -> (in,out))
    # Block-diagonal L so the per-layer aggregation is a single matmul.
    Lbd = jax.scipy.linalg.block_diag(*[L[b] for b in range(B)])  # (B*N, B*N)

    # Tiny-but-accurate cost hint: dispatch overhead dominates; help XLA overlap.
    flops = 2 * LAYERS * ((B * N) * (B * N) * F + (B * N) * F * F)
    bytes_accessed = (Lbd.size + x.size + Wt.size + bias.size + OUT_ROWS * F) * 4

    out = pl.pallas_call(
        gcn_kernel,
        out_shape=jax.ShapeDtypeStruct((OUT_ROWS, F), jnp.float32),
        grid_spec=pltpu.PrefetchScalarGridSpec(
            num_scalar_prefetch=0,
            grid=(1,),                                          # single kernel step
            in_specs=[
                pl.BlockSpec((B * N, B * N), lambda i: (0, 0)),    # block-diag L
                pl.BlockSpec((B, N, F), lambda i: (0, 0, 0)),      # x, full
                pl.BlockSpec((F, F), lambda i: (0, 0)),            # W^T
                pl.BlockSpec((1, F), lambda i: (0, 0)),            # bias
            ],
            out_specs=pl.BlockSpec((OUT_ROWS, F), lambda i: (0, 0)),
        ),
        compiler_params=pltpu.CompilerParams(dimension_semantics=("arbitrary",)),
        cost_estimate=pl.CostEstimate(
            flops=flops, transcendentals=0, bytes_accessed=bytes_accessed),
    )(Lbd, x, Wt, bias)

    # Rows are ordered (layer_step, batch, node) -> split back into m_all/d_all.
    out = out.reshape(LAYERS + 1, B, 2, F)
    m_all = jnp.transpose(out[:, :, 0, :], (1, 0, 2))   # (B, LAYERS+1, F)
    d_all = jnp.transpose(out[:, :, 1, :], (1, 0, 2))   # (B, LAYERS+1, F)
    return m_all, d_all


def gcn_reference(x, L, W, bias):
    """Pure-JAX reference mirroring the PyTorch forward (eval mode)."""
    m = [x[:, 0:1, :]]
    d = [x[:, 1:2, :]]
    for _ in range(LAYERS):
        a = jnp.einsum("bnm,bmf->bnf", L, x) @ W.T + bias
        a = jnp.maximum(a, 0.0)
        a = a + x
        x = a
        m.append(x[:, 0:1, :])
        d.append(x[:, 1:2, :])
    return jnp.concatenate(m, axis=1), jnp.concatenate(d, axis=1)


if __name__ == "__main__":
    key = jax.random.PRNGKey(0)
    k_x, k_l, k_w, k_b = jax.random.split(key, 4)

    x = jax.random.normal(k_x, (B, N, F), dtype=jnp.float32)
    # symmetric-ish normalized "Laplacian" for a sane forward pass
    L_raw = jax.random.normal(k_l, (B, N, N), dtype=jnp.float32)
    L = (L_raw + jnp.swapaxes(L_raw, 1, 2)) / (2.0 * N)

    # nn.Linear(inSize, outSize) parameters, initialized deterministically
    bound = 1.0 / (F ** 0.5)
    W = jax.random.uniform(k_w, (F, F), minval=-bound, maxval=bound, dtype=jnp.float32)
    bias = jax.random.uniform(k_b, (1, F), minval=-bound, maxval=bound, dtype=jnp.float32)

    m_all, d_all = gcn_forward(x, L, W, bias)
    jax.block_until_ready((m_all, d_all))

    m_ref, d_ref = gcn_reference(x, L, W, bias)
    assert m_all.shape == (B, LAYERS + 1, F) and d_all.shape == (B, LAYERS + 1, F)
    assert jnp.allclose(m_all, m_ref, atol=1e-5, rtol=1e-5)
    assert jnp.allclose(d_all, d_ref, atol=1e-5, rtol=1e-5)

    print("KERNEL_OK")
</pallas_src>

<mosaic_0001>
module attributes {stable_mosaic.version = 11 : i64} {
  func.func @gcn_kernel(%arg0: i32, %arg1: memref<16x16xf32, #tpu.memory_space<vmem>>, %arg2: memref<2x8x32xf32, #tpu.memory_space<vmem>>, %arg3: memref<32x32xf32, #tpu.memory_space<vmem>>, %arg4: memref<1x32xf32, #tpu.memory_space<vmem>>, %arg5: memref<16x32xf32, #tpu.memory_space<vmem>>) attributes {dimension_semantics = [#tpu.dimension_semantics<arbitrary>], iteration_bounds = array<i64: 1>, scalar_prefetch = 0 : i64, scratch_operands = 0 : i64, tpu.core_type = #tpu.core_type<tc>, window_params = [{pipeline_mode = #tpu.pipeline_mode<synchronous>, transform_indices = @transform_0, window_bounds = array<i64: 16, 16>}, {pipeline_mode = #tpu.pipeline_mode<synchronous>, transform_indices = @transform_1, window_bounds = array<i64: 2, 8, 32>}, {pipeline_mode = #tpu.pipeline_mode<synchronous>, transform_indices = @transform_2, window_bounds = array<i64: 32, 32>}, {pipeline_mode = #tpu.pipeline_mode<synchronous>, transform_indices = @transform_3, window_bounds = array<i64: 1, 32>}, {pipeline_mode = #tpu.pipeline_mode<synchronous>, transform_indices = @transform_4, window_bounds = array<i64: 16, 32>}]} {
    %c0 = arith.constant 0 : index
    %c0_0 = arith.constant 0 : index
    %0 = vector.load %arg1[%c0, %c0_0] : memref<16x16xf32, #tpu.memory_space<vmem>>, vector<16x16xf32>
    %c0_1 = arith.constant 0 : index
    %c0_2 = arith.constant 0 : index
    %1 = vector.load %arg3[%c0_1, %c0_2] : memref<32x32xf32, #tpu.memory_space<vmem>>, vector<32x32xf32>
    %c0_3 = arith.constant 0 : index
    %c0_4 = arith.constant 0 : index
    %2 = vector.load %arg4[%c0_3, %c0_4] : memref<1x32xf32, #tpu.memory_space<vmem>>, vector<1x32xf32>
    %3 = vector.shape_cast %2 : vector<1x32xf32> to vector<1x32xf32>
    %4 = vector.broadcast %3 : vector<1x32xf32> to vector<16x32xf32>
    %c0_5 = arith.constant 0 : index
    %c0_6 = arith.constant 0 : index
    %c0_7 = arith.constant 0 : index
    %5 = vector.load %arg2[%c0_5, %c0_6, %c0_7] : memref<2x8x32xf32, #tpu.memory_space<vmem>>, vector<2x8x32xf32>
    %6 = vector.shape_cast %5 : vector<2x8x32xf32> to vector<16x32xf32>
    %7 = vector.extract_strided_slice %6 {offsets = [0, 0], sizes = [2, 32], strides = [1, 1]} : vector<16x32xf32> to vector<2x32xf32>
    %c0_8 = arith.constant 0 : index
    %c0_9 = arith.constant 0 : index
    %8 = vector.load %arg5[%c0_8, %c0_9] : memref<16x32xf32, #tpu.memory_space<vmem>>, vector<2x32xf32>
    tpu.vector_store %arg5[%c0_8, %c0_9], %7 {strides = array<i32>} : memref<16x32xf32, #tpu.memory_space<vmem>>, vector<2x32xf32>,
    %9 = vector.extract_strided_slice %6 {offsets = [8, 0], sizes = [2, 32], strides = [1, 1]} : vector<16x32xf32> to vector<2x32xf32>
    %c2 = arith.constant 2 : index
    %c0_10 = arith.constant 0 : index
    %10 = vector.load %arg5[%c2, %c0_10] : memref<16x32xf32, #tpu.memory_space<vmem>>, vector<2x32xf32>
    tpu.vector_store %arg5[%c2, %c0_10], %9 {strides = array<i32>} : memref<16x32xf32, #tpu.memory_space<vmem>>, vector<2x32xf32>,
    %cst = arith.constant dense<0.000000e+00> : vector<16x32xf32>
    %11 = tpu.matmul %0, %6, %cst {dimension_numbers = #tpu.dot_dimension_numbers<[1], [0], [0], [1], [0, 0, 1, 1], [], []>} : vector<16x16xf32>, vector<16x32xf32>, vector<16x32xf32> -> vector<16x32xf32>
    %cst_11 = arith.constant dense<0.000000e+00> : vector<16x32xf32>
    %12 = tpu.matmul %11, %1, %cst_11 {dimension_numbers = #tpu.dot_dimension_numbers<[1], [0], [0], [1], [0, 0, 1, 1], [], []>} : vector<16x32xf32>, vector<32x32xf32>, vector<16x32xf32> -> vector<16x32xf32>
    %13 = arith.addf %12, %4 : vector<16x32xf32>
    %cst_12 = arith.constant 0.000000e+00 : f32
    %14 = vector.broadcast %cst_12 : f32 to vector<16x32xf32>
    %15 = arith.maximumf %13, %14 : vector<16x32xf32>
    %16 = arith.addf %15, %6 : vector<16x32xf32>
    %17 = vector.extract_strided_slice %16 {offsets = [0, 0], sizes = [2, 32], strides = [1, 1]} : vector<16x32xf32> to vector<2x32xf32>
    %c4 = arith.constant 4 : index
    %c0_13 = arith.constant 0 : index
    %18 = vector.load %arg5[%c4, %c0_13] : memref<16x32xf32, #tpu.memory_space<vmem>>, vector<2x32xf32>
    tpu.vector_store %arg5[%c4, %c0_13], %17 {strides = array<i32>} : memref<16x32xf32, #tpu.memory_space<vmem>>, vector<2x32xf32>,
    %19 = vector.extract_strided_slice %16 {offsets = [8, 0], sizes = [2, 32], strides = [1, 1]} : vector<16x32xf32> to vector<2x32xf32>
    %c6 = arith.constant 6 : index
    %c0_14 = arith.constant 0 : index
    %20 = vector.load %arg5[%c6, %c0_14] : memref<16x32xf32, #tpu.memory_space<vmem>>, vector<2x32xf32>
    tpu.vector_store %arg5[%c6, %c0_14], %19 {strides = array<i32>} : memref<16x32xf32, #tpu.memory_space<vmem>>, vector<2x32xf32>,
    %cst_15 = arith.constant dense<0.000000e+00> : vector<16x32xf32>
    %21 = tpu.matmul %0, %16, %cst_15 {dimension_numbers = #tpu.dot_dimension_numbers<[1], [0], [0], [1], [0, 0, 1, 1], [], []>} : vector<16x16xf32>, vector<16x32xf32>, vector<16x32xf32> -> vector<16x32xf32>
    %cst_16 = arith.constant dense<0.000000e+00> : vector<16x32xf32>
    %22 = tpu.matmul %21, %1, %cst_16 {dimension_numbers = #tpu.dot_dimension_numbers<[1], [0], [0], [1], [0, 0, 1, 1], [], []>} : vector<16x32xf32>, vector<32x32xf32>, vector<16x32xf32> -> vector<16x32xf32>
    %23 = arith.addf %22, %4 : vector<16x32xf32>
    %cst_17 = arith.constant 0.000000e+00 : f32
    %24 = vector.broadcast %cst_17 : f32 to vector<16x32xf32>
    %25 = arith.maximumf %23, %24 : vector<16x32xf32>
    %26 = arith.addf %25, %16 : vector<16x32xf32>
    %27 = vector.extract_strided_slice %26 {offsets = [0, 0], sizes = [2, 32], strides = [1, 1]} : vector<16x32xf32> to vector<2x32xf32>
    %c8 = arith.constant 8 : index
    %c0_18 = arith.constant 0 : index
    %28 = vector.load %arg5[%c8, %c0_18] : memref<16x32xf32, #tpu.memory_space<vmem>>, vector<2x32xf32>
    tpu.vector_store %arg5[%c8, %c0_18], %27 {strides = array<i32>} : memref<16x32xf32, #tpu.memory_space<vmem>>, vector<2x32xf32>,
    %29 = vector.extract_strided_slice %26 {offsets = [8, 0], sizes = [2, 32], strides = [1, 1]} : vector<16x32xf32> to vector<2x32xf32>
    %c10 = arith.constant 10 : index
    %c0_19 = arith.constant 0 : index
    %30 = vector.load %arg5[%c10, %c0_19] : memref<16x32xf32, #tpu.memory_space<vmem>>, vector<2x32xf32>
    tpu.vector_store %arg5[%c10, %c0_19], %29 {strides = array<i32>} : memref<16x32xf32, #tpu.memory_space<vmem>>, vector<2x32xf32>,
    %cst_20 = arith.constant dense<0.000000e+00> : vector<16x32xf32>
    %31 = tpu.matmul %0, %26, %cst_20 {dimension_numbers = #tpu.dot_dimension_numbers<[1], [0], [0], [1], [0, 0, 1, 1], [], []>} : vector<16x16xf32>, vector<16x32xf32>, vector<16x32xf32> -> vector<16x32xf32>
    %cst_21 = arith.constant dense<0.000000e+00> : vector<16x32xf32>
    %32 = tpu.matmul %31, %1, %cst_21 {dimension_numbers = #tpu.dot_dimension_numbers<[1], [0], [0], [1], [0, 0, 1, 1], [], []>} : vector<16x32xf32>, vector<32x32xf32>, vector<16x32xf32> -> vector<16x32xf32>
    %33 = arith.addf %32, %4 : vector<16x32xf32>
    %cst_22 = arith.constant 0.000000e+00 : f32
    %34 = vector.broadcast %cst_22 : f32 to vector<16x32xf32>
    %35 = arith.maximumf %33, %34 : vector<16x32xf32>
    %36 = arith.addf %35, %26 : vector<16x32xf32>
    %37 = vector.extract_strided_slice %36 {offsets = [0, 0], sizes = [2, 32], strides = [1, 1]} : vector<16x32xf32> to vector<2x32xf32>
    %c12 = arith.constant 12 : index
    %c0_23 = arith.constant 0 : index
    %38 = vector.load %arg5[%c12, %c0_23] : memref<16x32xf32, #tpu.memory_space<vmem>>, vector<2x32xf32>
    tpu.vector_store %arg5[%c12, %c0_23], %37 {strides = array<i32>} : memref<16x32xf32, #tpu.memory_space<vmem>>, vector<2x32xf32>,
    %39 = vector.extract_strided_slice %36 {offsets = [8, 0], sizes = [2, 32], strides = [1, 1]} : vector<16x32xf32> to vector<2x32xf32>
    %c14 = arith.constant 14 : index
    %c0_24 = arith.constant 0 : index
    %40 = vector.load %arg5[%c14, %c0_24] : memref<16x32xf32, #tpu.memory_space<vmem>>, vector<2x32xf32>
    tpu.vector_store %arg5[%c14, %c0_24], %39 {strides = array<i32>} : memref<16x32xf32, #tpu.memory_space<vmem>>, vector<2x32xf32>,
    return
  }
  func.func @transform_0(%arg0: i32) -> (i32, i32) {
    %c0_i32 = arith.constant 0 : i32
    %c0_i32_0 = arith.constant 0 : i32
    %c0_i32_1 = arith.constant 0 : i32
    return %c0_i32, %c0_i32_0 : i32, i32
  }
  func.func @transform_1(%arg0: i32) -> (i32, i32, i32) {
    %c0_i32 = arith.constant 0 : i32
    %c0_i32_0 = arith.constant 0 : i32
    %c0_i32_1 = arith.constant 0 : i32
    %c0_i32_2 = arith.constant 0 : i32
    return %c0_i32, %c0_i32_0, %c0_i32_1 : i32, i32, i32
  }
  func.func @transform_2(%arg0: i32) -> (i32, i32) {
    %c0_i32 = arith.constant 0 : i32
    %c0_i32_0 = arith.constant 0 : i32
    %c0_i32_1 = arith.constant 0 : i32
    return %c0_i32, %c0_i32_0 : i32, i32
  }
  func.func @transform_3(%arg0: i32) -> (i32, i32) {
    %c0_i32 = arith.constant 0 : i32
    %c0_i32_0 = arith.constant 0 : i32
    %c0_i32_1 = arith.constant 0 : i32
    return %c0_i32, %c0_i32_0 : i32, i32
  }
  func.func @transform_4(%arg0: i32) -> (i32, i32) {
    %c0_i32 = arith.constant 0 : i32
    %c0_i32_0 = arith.constant 0 : i32
    %c0_i32_1 = arith.constant 0 : i32
    return %c0_i32, %c0_i32_0 : i32, i32
  }
}

</mosaic_0001>

<bundles_post_ra>
// kernel: tpu_custom_call.1
= control target key start
LH: loop header
LB: loop body
LE: loop exit
PB: predicated region body
PF: predicated region fallthrough
CT: control target
= control target key end

     0   :  { %9 = vsyncpa [#allocation3], 0  ;;  %s490_s0 = inlined_call_operand.hbm [shape: f32[16,16], index: 0, kind: input, shape index: {}]   ;;  %s491_s1 = inlined_call_operand.hbm [shape: f32[2,8,32], index: 1, kind: input, shape index: {}]   ;;  %s492_s2 = inlined_call_operand.hbm [shape: f32[32,32], index: 2, kind: input, shape index: {}]   ;;  %s493_s3 = inlined_call_operand.vmem [shape: f32[1,32], index: 3, kind: input, shape index: {}]   ;;  %s494_s4 = inlined_call_operand.hbm [shape: f32[16,32], index: 4, kind: output, shape index: {}]  }
   0x1   :  { %10 = vsyncpa [#allocation6], 0 }
   0x2   :  { %11 = vsyncpa [#allocation4], 0  ;;  %s29_s17 = sshll.u32 %s491_s1, 4  ;;  %s407_s18 = smov [#allocation5]   ;;  %s30_s17 = int_to_ptr.hbm [resolvable:$true] %s29_s17 }
   0x3   :  { %s31_s19 = sshll.u32 %s407_s18, 4  ;;  %s16_s22 = sshll.u32 %s490_s0, 4  ;;  %s32_s19 = int_to_ptr.vmem [resolvable:$true] %s31_s19  ;;  %s17_s22 = int_to_ptr.hbm [resolvable:$true] %s16_s22 }
   0x4   :  { %s408_s23 = smov 128   ;;  %s409_s24 = smov 8  }
   0x5   :  { %37 = dma.hbm_to_vmem [thread:$0]  %s30_s17, 256, %s32_s19, [#allocation6], %s408_s23, %s408_s23, %s409_s24  }
   0x6   :  { %s410_s25 = smov [#allocation2]   ;;  %s42_s1 = sshll.u32 %s492_s2, 4  ;;  %s43_s1 = int_to_ptr.hbm [resolvable:$true] %s42_s1 }
   0x7   :  { %s18_s26 = sshll.u32 %s410_s25, 4  ;;  %s411_s0 = smov [#allocation7]   ;;  %s19_s26 = int_to_ptr.vmem [resolvable:$true] %s18_s26 }
   0x8   :  { %24 = dma.hbm_to_vmem [thread:$0]  %s17_s22, 256, %s19_s26, [#allocation3], %s408_s23, %s408_s23, %s409_s24  }
   0x9   :  { %s44_s29 = sshll.u32 %s411_s0, 4  ;;  %s45_s29 = int_to_ptr.vmem [resolvable:$true] %s44_s29 }
   0xa   :  { %50 = dma.hbm_to_vmem [thread:$0]  %s43_s1, 512, %s45_s29, [#allocation6], %s408_s23, %s408_s23, %s409_s24  }
   0xb   :  { %401 = dma.done.wait [#allocation3], 256  }
   0xc   :  { %402 = vsyncadd [#allocation3], 4294967040 }
   0xd   :  { %403 = dma.done.wait [#allocation6], 768  }
   0xe   :  { %404 = vsyncadd [#allocation6], 4294966528  ;;  %v76_v0 = vld [vmem:[#allocation5 + $0x8] sm:$0xff]  ;;  %vm77_vm0 = vcmask 254976   ;;  %v75_v1 = vld [vmem:[#allocation5] sm:$0xff]  ;;  %vm80_vm1 = vcmask 130048  }
   0xf   :  { %79 = vst.msk [vmem:[#allocation8 + $0x2] sm:$0x3] %vm77_vm0, %v76_v0  ;;  %101 = vmatpush.msra.mxu0 %v76_v0  ;;  %v457_v2 = vld [vmem:[#allocation2] sm:$0xff]  ;;  %294 = vmatpush.msra.mxu1 %v76_v0  ;;  %v66_v3 = vld [vmem:[#allocation2 + $0x8] sm:$0xff]  ;;  %v70_v4 = vld [vmem:[#allocation7 + $0x18] sm:$0xff]  ;;  %vm110_vm2 = vcmask 261120  }
  0x10   :  { %78 = vst.msk [vmem:[#allocation8] sm:$0x3] %vm77_vm0, %v75_v1  ;;  %v69_v5 = vld [vmem:[#allocation7 + $0x10] sm:$0xff]  ;;  %v68_v6 = vld [vmem:[#allocation7 + $0x8] sm:$0xff]  ;;  %v67_v7 = vld [vmem:[#allocation7] sm:$0xff]  ;;  %s268_s8 = sshll.u32 %s494_s4, 4  ;;  %s269_s8 = int_to_ptr.hbm [resolvable:$true] %s268_s8 }
  0x11   :  { %102 = vmatpush.msra.mxu0 %v75_v1  ;;  %295 = vmatpush.msra.mxu1 %v75_v1  ;;  %v304_v10 = vld [vmem:[%s493_s3] ss:$0 sm:$0xff]  ;;  %s412_s3 = smov [#allocation8]  }
  0x12   :  { %282 = vmatmul.msk.f32.vlgmr.msra.gmra.mxu0 %vm80_vm1, %v457_v2  ;;  %283 = vmatmul.msk.f32.vlgmr.msra.gmra.mxu1 %vm80_vm1, %v66_v3  ;;  %s266_s5 = sshll.u32 %s412_s3, 4  ;;  %s267_s5 = int_to_ptr.vmem [resolvable:$true] %s266_s5 }
  0x13   :  { %129 = vmatpush.msrb.mxu1 %v70_v4 }
  0x15   :  { %130 = vmatpush.msrb.mxu1 %v69_v5 }
  0x17   :  { %131 = vmatpush.msrb.mxu1 %v68_v6 }
  0x19   :  { %132 = vmatpush.msrb.mxu1 %v67_v7 }
  0x8f   :  { %v104_v8 = vpop.f32.mrf.mxu0  ;;  %v107_v9 = vpop.f32.mrf.mxu1 }
  0x90   :  { %284 = vmatmul.msk.f32.vlgmr.msrb.gmra.mxu1 %vm110_vm2, %v104_v8 }
  0x98   :  { %285 = vmatmul.msk.f32.gmra.mxu1 %vm110_vm2, %v107_v9 }
 0x10d   :  { %v134_v11 = vpop.f32.mrf.mxu1 }
 0x10e   :  { %v135_v12 = vadd.f32 %v304_v10, %v134_v11 }
 0x110   :  { %v140_v13 = vmax.f32 %v135_v12, 0.0 }
 0x112   :  { %v142_v14 = vadd.f32 %v140_v13, %v75_v1 }
 0x114   :  { %144 = vst.msk [vmem:[#allocation8 + $0x4] sm:$0x3] %vm77_vm0, %v142_v14 }
 0x115   :  { %v137_v15 = vpop.f32.mrf.mxu1 }
 0x116   :  { %v138_v16 = vadd.f32 %v304_v10, %v137_v15 }
 0x118   :  { %v141_v17 = vmax.f32 %v138_v16, 0.0 }
 0x11a   :  { %v143_v18 = vadd.f32 %v141_v17, %v76_v0 }
 0x11c   :  { %145 = vst.msk [vmem:[#allocation8 + $0x6] sm:$0x3] %vm77_vm0, %v143_v18  ;;  %160 = vmatpush.msra.mxu2 %v143_v18  ;;  %296 = vmatpush.msra.mxu3 %v143_v18 }
 0x11e   :  { %161 = vmatpush.msra.mxu2 %v142_v14  ;;  %297 = vmatpush.msra.mxu3 %v142_v14 }
 0x11f   :  { %286 = vmatmul.msk.f32.vlgmr.msra.gmra.mxu2 %vm80_vm1, %v457_v2  ;;  %287 = vmatmul.msk.f32.vlgmr.msra.gmra.mxu3 %vm80_vm1, %v66_v3 }
 0x120   :  { %187 = vmatpush.msrb.mxu3 %v70_v4  ;;  %245 = vmatpush.msrb.mxu2 %v70_v4 }
 0x122   :  { %188 = vmatpush.msrb.mxu3 %v69_v5  ;;  %246 = vmatpush.msrb.mxu2 %v69_v5 }
 0x124   :  { %189 = vmatpush.msrb.mxu3 %v68_v6  ;;  %247 = vmatpush.msrb.mxu2 %v68_v6 }
 0x126   :  { %190 = vmatpush.msrb.mxu3 %v67_v7  ;;  %248 = vmatpush.msrb.mxu2 %v67_v7 }
 0x1a2   :  { %v163_v19 = vpop.f32.mrf.mxu2  ;;  %v166_v20 = vpop.f32.mrf.mxu3 }
 0x1a3   :  { %288 = vmatmul.msk.f32.vlgmr.msrb.gmra.mxu3 %vm110_vm2, %v163_v19 }
 0x1ab   :  { %289 = vmatmul.msk.f32.gmra.mxu3 %vm110_vm2, %v166_v20 }
 0x226   :  { %v192_v21 = vpop.f32.mrf.mxu3 }
 0x227   :  { %v193_v22 = vadd.f32 %v304_v10, %v192_v21 }
 0x229   :  { %v198_v23 = vmax.f32 %v193_v22, 0.0 }
 0x22b   :  { %v200_v24 = vadd.f32 %v198_v23, %v142_v14 }
 0x22d   :  { %202 = vst.msk [vmem:[#allocation8 + $0x8] sm:$0x3] %vm77_vm0, %v200_v24 }
 0x22e   :  { %v195_v25 = vpop.f32.mrf.mxu3 }
 0x22f   :  { %v196_v26 = vadd.f32 %v304_v10, %v195_v25 }
 0x231   :  { %v199_v27 = vmax.f32 %v196_v26, 0.0 }
 0x233   :  { %v201_v28 = vadd.f32 %v199_v27, %v143_v18 }
 0x235   :  { %203 = vst.msk [vmem:[#allocation8 + $0xa] sm:$0x3] %vm77_vm0, %v201_v28  ;;  %218 = vmatpush.msrb.mxu0 %v201_v28 }
 0x237   :  { %219 = vmatpush.msrb.mxu0 %v200_v24 }
 0x238   :  { %290 = vmatmul.msk.f32.vlgmr.msrb.gmra.mxu0 %vm80_vm1, %v457_v2 }
 0x240   :  { %291 = vmatmul.msk.f32.gmra.mxu0 %vm80_vm1, %v66_v3 }
 0x2b5   :  { %v221_v29 = vpop.f32.mrf.mxu0 }
 0x2b6   :  { %292 = vmatmul.msk.f32.vlgmr.msrb.gmra.mxu2 %vm110_vm2, %v221_v29 }
 0x2bd   :  { %v224_v30 = vpop.f32.mrf.mxu0 }
 0x2be   :  { %293 = vmatmul.msk.f32.gmra.mxu2 %vm110_vm2, %v224_v30 }
 0x339   :  { %v250_v31 = vpop.f32.mrf.mxu2 }
 0x33a   :  { %v251_v32 = vadd.f32 %v304_v10, %v250_v31 }
 0x33c   :  { %v256_v33 = vmax.f32 %v251_v32, 0.0 }
 0x33e   :  { %v258_v34 = vadd.f32 %v256_v33, %v200_v24 }
 0x340   :  { %260 = vst.msk [vmem:[#allocation8 + $0xc] sm:$0x3] %vm77_vm0, %v258_v34 }
 0x341   :  { %v253_v35 = vpop.f32.mrf.mxu2 }
 0x342   :  { %v254_v36 = vadd.f32 %v304_v10, %v253_v35 }
 0x344   :  { %v257_v37 = vmax.f32 %v254_v36, 0.0 }
 0x346   :  { %v259_v38 = vadd.f32 %v257_v37, %v201_v28 }
 0x348   :  { %261 = vst.msk [vmem:[#allocation8 + $0xe] sm:$0x3] %vm77_vm0, %v259_v38 }
 0x349   :  { %274 = dma.vmem_to_hbm [thread:$0]  %s267_s5, 256, %s269_s8, [#allocation4], %s408_s23, %s408_s23, %s409_s24  }
 0x34a   :  { %405 = dma.done.wait [#allocation4], 256  }
 0x34b   :  { %406 = vsyncadd [#allocation4], 4294967040 }
 0x34c   :  { %279 = vsyncpa [#allocation3], 1 }
 0x34d   :  { %280 = vsyncpa [#allocation6], 1 }
 0x34e   :  { %281 = vsyncpa [#allocation4], 1 }

</bundles_post_ra>
